<compile_context>
chip_gen: v7x
topology: tpu7x:2x2x1
jax: 0.10.0
libtpu: 0.0.40
codegen_flags: <defaults>
</compile_context>

<pallas_src>
import jax
import jax.numpy as jnp
from jax.experimental import pallas as pl
from jax.experimental.pallas import tpu as pltpu


def _attention_kernel(xt_ref, w1t_ref, b1_ref, w2_ref, out_ref):
    # xt_ref : (1, D, N) block for this group (N on lanes)
    # w1t_ref: (H, D), b1_ref: (H, 1), w2_ref: (H, 1)  -- resident across the grid
    # out_ref: (1, 1, N)
    xt = xt_ref[0]                                                   # (D, N)

    # h = relu(W1 x + b1), lane-dense in N                           (H, N)
    h = jnp.dot(w1t_ref[...], xt, preferred_element_type=jnp.float32)
    h = jnp.maximum(h + b1_ref[...], 0.0)

    # scores s = w2 . h  -> (1, N): VPU broadcast-mul + sublane (XLU) reduce,
    # no second MXU pass needed for a 16-deep contraction.
    s = jnp.sum(h * w2_ref[...], axis=0, keepdims=True)              # (1, N)
    # b2 omitted on purpose: softmax(s + c) == softmax(s).

    # softmax over the N scores of this group
    m = jnp.max(s, axis=1, keepdims=True)
    e = jnp.exp(s - m)
    inv = pl.reciprocal(jnp.sum(e, axis=1, keepdims=True), approx=False)
    out_ref[0] = e * inv


def _attention_call(xt, w1t, b1_col, w2_col):
    """xt: (B, D, N). Returns (B, 1, N) per-group softmax weights."""
    B, D, N = xt.shape
    H = w1t.shape[0]
    return pl.pallas_call(
        _attention_kernel,
        out_shape=jax.ShapeDtypeStruct((B, 1, N), jnp.float32),
        grid_spec=pltpu.PrefetchScalarGridSpec(
            num_scalar_prefetch=0,
            grid=(B,),
            in_specs=[
                pl.BlockSpec((1, D, N), lambda b: (b, 0, 0)),   # per-group xT slab
                pl.BlockSpec((H, D), lambda b: (0, 0)),         # weights: constant
                pl.BlockSpec((H, 1), lambda b: (0, 0)),         # index_map -> stay
                pl.BlockSpec((H, 1), lambda b: (0, 0)),         # resident in VMEM
            ],
            out_specs=pl.BlockSpec((1, 1, N), lambda b: (b, 0, 0)),
        ),
        compiler_params=pltpu.CompilerParams(
            dimension_semantics=("parallel",)),   # groups shard across cores (v7x: 2 TCs)
    )(xt, w1t, b1_col, w2_col)


def attention_layer(x, w1, b1, w2, b2):
    """Single group. x: (N, D) float32 -> (1, N) softmax attention weights
    (matches AttentionLayer.forward)."""
    N, D = x.shape
    H = w1.shape[1]
    xt = x.T[None]                    # (1, D, N): lane-dense in N
    w1t = w1.T                        # (H, D)
    b1_col = b1.reshape(H, 1)
    w2_col = w2.reshape(H, 1)
    # b2 is intentionally unused: it is a uniform shift of the scores and
    # cancels exactly under the softmax.
    del b2
    out = _attention_call(xt, w1t, b1_col, w2_col)   # (1, 1, N)
    return out.reshape(1, N)


def attention_layer_batched(x, w1, b1, w2, b2):
    """B independent groups in one pallas_call. x: (B, N, D) -> (B, N);
    row g is the softmax over group g's N scores."""
    B, N, D = x.shape
    H = w1.shape[1]
    xt = jnp.transpose(x, (0, 2, 1))  # (B, D, N)
    w1t = w1.T
    b1_col = b1.reshape(H, 1)
    w2_col = w2.reshape(H, 1)
    del b2
    out = _attention_call(xt, w1t, b1_col, w2_col)   # (B, 1, N)
    return out.reshape(B, N)


def _reference(x, w1, b1, w2, b2):
    h = jnp.maximum(x @ w1 + b1, 0.0)
    s = (h @ w2.reshape(-1, 1) + b2).reshape(1, -1)
    return jax.nn.softmax(s, axis=1)


if __name__ == "__main__":
    # Small shapes consistent with the module: N=8 members, embedding_dim=32, hidden=16.
    N, D, H, B = 8, 32, 16, 4
    key = jax.random.PRNGKey(0)
    kx, kxb, k1, k2, k3, k4 = jax.random.split(key, 6)

    x = jax.random.normal(kx, (N, D), dtype=jnp.float32)
    xb = jax.random.normal(kxb, (B, N, D), dtype=jnp.float32)
    # Synthetic parameters with the same shapes as nn.Linear(D,16) / nn.Linear(16,1).
    w1 = jax.random.normal(k1, (D, H), dtype=jnp.float32) * 0.1
    b1 = jax.random.normal(k2, (H,), dtype=jnp.float32) * 0.1
    w2 = jax.random.normal(k3, (H,), dtype=jnp.float32) * 0.1
    b2 = jax.random.normal(k4, (1,), dtype=jnp.float32) * 0.1

    # Single-group path (exactly the module's forward).
    out = jax.block_until_ready(attention_layer(x, w1, b1, w2, b2))
    ref = _reference(x, w1, b1, w2, b2)
    assert out.shape == (1, N)
    assert jnp.allclose(out, ref, atol=1e-5, rtol=1e-5), (out, ref)
    assert jnp.allclose(jnp.sum(out), 1.0, atol=1e-5)

    # Batched path: B independent groups amortized over one parallel grid.
    outb = jax.block_until_ready(attention_layer_batched(xb, w1, b1, w2, b2))
    refb = jnp.concatenate(
        [_reference(xb[g], w1, b1, w2, b2) for g in range(B)], axis=0)
    assert outb.shape == (B, N)
    assert jnp.allclose(outb, refb, atol=1e-5, rtol=1e-5), (outb, refb)
    assert jnp.allclose(jnp.sum(outb, axis=1), jnp.ones((B,)), atol=1e-5)

    print("KERNEL_OK")
</pallas_src>

<mosaic_0001>
module attributes {stable_mosaic.version = 11 : i64} {
  func.func @_attention_kernel(%arg0: i32, %arg1: memref<1x32x8xf32, #tpu.memory_space<vmem>>, %arg2: memref<16x32xf32, #tpu.memory_space<vmem>>, %arg3: memref<16x1xf32, #tpu.memory_space<vmem>>, %arg4: memref<16x1xf32, #tpu.memory_space<vmem>>, %arg5: memref<1x1x8xf32, #tpu.memory_space<vmem>>) attributes {dimension_semantics = [#tpu.dimension_semantics<parallel>], iteration_bounds = array<i64: 1>, scalar_prefetch = 0 : i64, scratch_operands = 0 : i64, tpu.core_type = #tpu.core_type<tc>, window_params = [{transform_indices = @transform_0, window_bounds = array<i64: 1, 32, 8>}, {pipeline_mode = #tpu.pipeline_mode<synchronous>, transform_indices = @transform_1, window_bounds = array<i64: 16, 32>}, {pipeline_mode = #tpu.pipeline_mode<synchronous>, transform_indices = @transform_2, window_bounds = array<i64: 16, 1>}, {pipeline_mode = #tpu.pipeline_mode<synchronous>, transform_indices = @transform_3, window_bounds = array<i64: 16, 1>}, {transform_indices = @transform_4, window_bounds = array<i64: 1, 1, 8>}]} {
    %c0 = arith.constant 0 : index
    %c0_0 = arith.constant 0 : index
    %c0_1 = arith.constant 0 : index
    %0 = vector.load %arg1[%c0, %c0_0, %c0_1] : memref<1x32x8xf32, #tpu.memory_space<vmem>>, vector<1x32x8xf32>
    %1 = vector.shape_cast %0 : vector<1x32x8xf32> to vector<32x8xf32>
    %c0_2 = arith.constant 0 : index
    %c0_3 = arith.constant 0 : index
    %2 = vector.load %arg2[%c0_2, %c0_3] : memref<16x32xf32, #tpu.memory_space<vmem>>, vector<16x32xf32>
    %cst = arith.constant dense<0.000000e+00> : vector<16x8xf32>
    %3 = tpu.matmul %2, %1, %cst {dimension_numbers = #tpu.dot_dimension_numbers<[1], [0], [0], [1], [0, 0, 1, 1], [], []>} : vector<16x32xf32>, vector<32x8xf32>, vector<16x8xf32> -> vector<16x8xf32>
    %c0_4 = arith.constant 0 : index
    %c0_5 = arith.constant 0 : index
    %4 = vector.load %arg3[%c0_4, %c0_5] : memref<16x1xf32, #tpu.memory_space<vmem>>, vector<16x1xf32>
    %5 = vector.broadcast %4 : vector<16x1xf32> to vector<16x8xf32>
    %6 = arith.addf %3, %5 : vector<16x8xf32>
    %cst_6 = arith.constant 0.000000e+00 : f32
    %7 = vector.broadcast %cst_6 : f32 to vector<16x8xf32>
    %8 = arith.maximumf %6, %7 : vector<16x8xf32>
    %c0_7 = arith.constant 0 : index
    %c0_8 = arith.constant 0 : index
    %9 = vector.load %arg4[%c0_7, %c0_8] : memref<16x1xf32, #tpu.memory_space<vmem>>, vector<16x1xf32>
    %10 = vector.broadcast %9 : vector<16x1xf32> to vector<16x8xf32>
    %11 = arith.mulf %8, %10 : vector<16x8xf32>
    %cst_9 = arith.constant dense<0.000000e+00> : vector<8xf32>
    %12 = vector.multi_reduction <add>, %11, %cst_9 [0] : vector<16x8xf32> to vector<8xf32>
    %13 = vector.shape_cast %12 : vector<8xf32> to vector<1x8xf32>
    %cst_10 = arith.constant dense<0xFF800000> : vector<1xf32>
    %14 = vector.multi_reduction <maximumf>, %13, %cst_10 [1] : vector<1x8xf32> to vector<1xf32>
    %15 = vector.shape_cast %14 : vector<1xf32> to vector<1x1xf32>
    %16 = vector.broadcast %15 : vector<1x1xf32> to vector<1x8xf32>
    %17 = arith.subf %13, %16 : vector<1x8xf32>
    %18 = math.exp %17 : vector<1x8xf32>
    %cst_11 = arith.constant dense<0.000000e+00> : vector<1xf32>
    %19 = vector.multi_reduction <add>, %18, %cst_11 [1] : vector<1x8xf32> to vector<1xf32>
    %20 = vector.shape_cast %19 : vector<1xf32> to vector<1x1xf32>
    %21 = tpu.reciprocal %20 : vector<1x1xf32> -> vector<1x1xf32>
    %22 = vector.broadcast %21 : vector<1x1xf32> to vector<1x8xf32>
    %23 = arith.mulf %18, %22 : vector<1x8xf32>
    %c0_12 = arith.constant 0 : index
    %c0_13 = arith.constant 0 : index
    %c0_14 = arith.constant 0 : index
    %24 = vector.load %arg5[%c0_12, %c0_13, %c0_14] : memref<1x1x8xf32, #tpu.memory_space<vmem>>, vector<1x1x8xf32>
    %25 = vector.shape_cast %24 : vector<1x1x8xf32> to vector<1x8xf32>
    %26 = vector.shape_cast %23 : vector<1x8xf32> to vector<1x1x8xf32>
    tpu.vector_store %arg5[%c0_12, %c0_13, %c0_14], %26 {strides = array<i32>} : memref<1x1x8xf32, #tpu.memory_space<vmem>>, vector<1x1x8xf32>,
    return
  }
  func.func @transform_0(%arg0: i32) -> (i32, i32, i32) {
    %c0_i32 = arith.constant 0 : i32
    %c0_i32_0 = arith.constant 0 : i32
    %c0_i32_1 = arith.constant 0 : i32
    return %arg0, %c0_i32, %c0_i32_0 : i32, i32, i32
  }
  func.func @transform_1(%arg0: i32) -> (i32, i32) {
    %c0_i32 = arith.constant 0 : i32
    %c0_i32_0 = arith.constant 0 : i32
    %c0_i32_1 = arith.constant 0 : i32
    return %c0_i32, %c0_i32_0 : i32, i32
  }
  func.func @transform_2(%arg0: i32) -> (i32, i32) {
    %c0_i32 = arith.constant 0 : i32
    %c0_i32_0 = arith.constant 0 : i32
    %c0_i32_1 = arith.constant 0 : i32
    return %c0_i32, %c0_i32_0 : i32, i32
  }
  func.func @transform_3(%arg0: i32) -> (i32, i32) {
    %c0_i32 = arith.constant 0 : i32
    %c0_i32_0 = arith.constant 0 : i32
    %c0_i32_1 = arith.constant 0 : i32
    return %c0_i32, %c0_i32_0 : i32, i32
  }
  func.func @transform_4(%arg0: i32) -> (i32, i32, i32) {
    %c0_i32 = arith.constant 0 : i32
    %c0_i32_0 = arith.constant 0 : i32
    %c0_i32_1 = arith.constant 0 : i32
    return %arg0, %c0_i32, %c0_i32_0 : i32, i32, i32
  }
}

</mosaic_0001>

<bundles_post_ra>
// kernel: tpu_custom_call.1
= control target key start
LH: loop header
LB: loop body
LE: loop exit
PB: predicated region body
PF: predicated region fallthrough
CT: control target
= control target key end

     0   :  { %vm36_vm0 = vcmask 261120   ;;  %v230_v6 = vmov 0   ;;  %s305_s0 = inlined_call_operand.vmem [shape: f32[1,32,8], index: 0, kind: input, shape index: {}]   ;;  %s306_s1 = inlined_call_operand.vmem [shape: f32[16,32], index: 1, kind: input, shape index: {}]   ;;  %s307_s2 = inlined_call_operand.vmem [shape: f32[16,1], index: 2, kind: input, shape index: {}]   ;;  %s308_s3 = inlined_call_operand.vmem [shape: f32[16,1], index: 3, kind: input, shape index: {}]   ;;  %s309_s4 = inlined_call_operand.hbm [shape: f32[1,1,8], index: 4, kind: output, shape index: {}]  }
   0x1   :  { %v18_v0 = vld [vmem:[%s305_s0] sm:$0xff]  ;;  %v19_v1 = vld [vmem:[%s305_s0 + $0x8] sm:$0xff]  ;;  %v20_v2 = vld [vmem:[%s305_s0 + $0x10] sm:$0xff]  ;;  %200 = vset.pattern.permute.xlu0 %v230_v6  ;;  %201 = vset.pattern.permute.xlu1 %v230_v6 }
   0x2   :  { %v190_v3 = vpack.c.bf16 %v19_v1, %v18_v0  ;;  %v21_v4 = vld [vmem:[%s305_s0 + $0x18] sm:$0xff]  ;;  %v22_v5 = vld [vmem:[%s306_s1] sm:$0xff] }
   0x3   :  { %v194_v7 = vpack.c.bf16 %v21_v4, %v20_v2  ;;  %187 = vmatprep.mubr.msk.f32.mxu0 %vm36_vm0, %v22_v5  ;;  %v24_v8 = vld [vmem:[%s307_s2] sm:$0xff] }
   0x4   :  { %v120_v9 = vld [vmem:[%s308_s3] sm:$0xff]  ;;  %191 = vmatprep.subr.bf16.mxu0 %v190_v3  ;;  %28 = vperm.xlu0 %200, %v24_v8  }
   0x5   :  { %9 = vsyncpa [#allocation3], 0  ;;  %193 = vmatpush3.bf16.msra.mxu0 %v190_v3  ;;  %124 = vperm.xlu1 %201, %v120_v9   ;;  %v25_v10 = vld [vmem:[%s307_s2 + $0x8] sm:$0xff]  ;;  %vm134_vm1 = vcmask 64512   ;;  %vm155_vm2 = vcmask 57344  }
   0x6   :  { %195 = vmatprep.subr.bf16.mxu0 %v194_v7  ;;  %v121_v11 = vld [vmem:[%s308_s3 + $0x8] sm:$0xff] }
   0x7   :  { %v23_v12 = vld [vmem:[%s306_s1 + $0x8] sm:$0xff]  ;;  %s231_s1 = smov [#allocation2]  }
   0x8   :  { %33 = vperm.xlu0 %200, %v25_v10   ;;  %s163_s2 = sshll.u32 %s231_s1, 4  ;;  %s164_s2 = int_to_ptr.vmem [resolvable:$true] %s163_s2 }
   0x9   :  { %197 = vmatpush3.bf16.msra.mxu0 %v194_v7  ;;  %129 = vperm.xlu1 %201, %v121_v11   ;;  %s206_s3 = scalar_lea.vmem %s164_s2, 16  ;;  %s210_s8 = scalar_lea.vmem %s164_s2, 32 }
   0xa   :  { %p207_p0 = scmp.ne.s32.totalorder %s164_s2, %s206_s3  ;;  %p211_p1 = scmp.lt.s32.totalorder %s164_s2, %s164_s2 }
   0xb   :  { %p212_p2 = scmp.lt.s32.totalorder %s210_s8, %s206_s3 }
   0xc   :  { %188 = vmatmul.mubr.msk.f32.vlgmr.msra.gmra.mrb[0].mxu0 %vm36_vm0, %v23_v12 }
   0xd   :  { %p213_p3 = por %p212_p2, %p211_p1 }
   0xf   :  { %p214_p4 = pnand %p213_p3, %p207_p0 }
  0x83   :  { %v29_v13 = vpop.permute.xlu0 %28 }
  0x84   :  { %v125_v14 = vpop.permute.xlu1 %124 }
  0x87   :  { %v34_v15 = vpop.permute.xlu0 %33 }
  0x88   :  { %v130_v21 = vpop.permute.xlu1 %129 }
  0xdf   :  { %v189_v16 = vpop.f32.mrb[0].mxu0 }
  0xe0   :  { %v115_v17 = vadd.f32 %v189_v16, %v34_v15  ;;  %v109_v18 = vpop.f32.mrb[1].mxu0 }
  0xe1   :  { %v110_v19 = vadd.f32 %v109_v18, %v29_v13 }
  0xe2   :  { %v119_v20 = vmax.f32 %v115_v17, 0.0 }
  0xe3   :  { %v118_v22 = vmax.f32 %v110_v19, 0.0 }
  0xe4   :  { %v133_v23 = vmul.f32 %v130_v21, %v119_v20 }
  0xe5   :  { %v132_v24 = vmul.f32 %v125_v14, %v118_v22 }
  0xe6   :  { %v136_v25 = vsel %vm134_vm1, %v133_v23, 0.0 }
  0xe7   :  { %v135_v26 = vsel %vm134_vm1, %v132_v24, 0.0 }
  0xe8   :  { %v137_v27 = vadd.f32 %v136_v25, %v135_v26 }
  0xea   :  { %v138_v28 = vrot.slane %v137_v27, 4 }
  0xec   :  { %v139_v29 = vadd.f32 %v138_v28, %v137_v27 }
  0xee   :  { %v140_v30 = vrot.slane %v139_v29, 2 }
  0xf0   :  { %v141_v31 = vadd.f32 %v140_v30, %v139_v29 }
  0xf2   :  { %v142_v32 = vrot.slane %v141_v31, 1 }
  0xf4   :  { %v143_v33 = vadd.f32 %v142_v32, %v141_v31 }
  0xf6   :  { %v144_v34 = vsel %vm134_vm1, %v143_v33, -inf }
  0xf7   :  { %145 = vmax.xlane.f32.xlu0 %v144_v34 }
 0x184   :  { %v146_v35 = vpop.xlane.xlu0 %145 }
 0x185   :  { %v147_v36 = vsub.f32 %v143_v33, %v146_v35 }
 0x187   :  { %v148_v37 = vmul.f32 1.442695, %v147_v36 }
 0x189   :  { %202 = vpow2.f32 %v148_v37 }
 0x193   :  { %v203_v38 = vpop.eup %202 }
 0x194   :  { %v150_v39 = vsel %vm134_vm1, %v203_v38, 0.0 }
 0x195   :  { %151 = vadd.xlane.f32.xlu1 %v150_v39 }
 0x222   :  { %v152_v40 = vpop.xlane.xlu1 %151 }
 0x223   :  { %204 = vrcp.f32 %v152_v40 }
 0x22d   :  { %v205_v41 = vpop.eup %204 }
 0x22e   :  { %v154_v42 = vmul.f32 %v205_v41, %v203_v38 }
 0x230   :  { %156 = vst.msk [vmem:[#allocation2] sm:$0x1] %vm155_vm2, %v154_v42 }
 0x231   :  { %217 = shalt.err (!%p214_p4)
}
 0x232   :  { %s218_s11 = scalar_lea.hbm %s309_s4, 16 }
 0x233   :  { %p219_p5 = scmp.ne.s32.totalorder %s309_s4, %s218_s11  ;;  %p222_p6 = scmp.lt.u32.totalorder %s218_s11, %s309_s4 }
 0x235   :  { %p224_p7 = pnand %p222_p6, %p219_p5 }
 0x237   :  { %227 = shalt.err (!%p224_p7)
}
 0x238   :  { %166 = dma.vmem_to_hbm [thread:$0]  %s164_s2, 16, %s309_s4, [#allocation3]  }
 0x239   :  { %228 = dma.done.wait [#allocation3], 16  }
 0x23a   :  { %229 = vsyncadd [#allocation3], 4294967280 }
 0x23b   :  { %170 = vsyncpa [#allocation3], 1 }

</bundles_post_ra>
